<compile_context>
chip_gen: v6e
topology: v6e:2x2x1
jax: 0.10.0
libtpu: 0.0.40
codegen_flags: <defaults>
</compile_context>

<pallas_src>
import functools
import math

import jax
import jax.numpy as jnp
from jax import lax
from jax.experimental import pallas as pl
from jax.experimental.pallas import tpu as pltpu

_INV_SQRT2 = 1.0 / math.sqrt(2.0)


def _gelu_exact(x):
    # PyTorch nn.GELU() default: exact erf-based GELU.
    return 0.5 * x * (1.0 + lax.erf(x * _INV_SQRT2))


def bottleneck_kernel(x_ref, p_ref, out_ref, *, H, W, B, Cin, Cmid, Cout):
    """Fused Bottleneck on a batch-folded layout.

    x_ref  : (B*Cin,  H*W)  input rows  (row r = n*Cin + c), lane-dense spatial
    p_ref  : (Rmax, 22+R1+Rm) packed parameter slab (see _pack_params)
    out_ref: (B*Cout, H*W)
    """
    HW = H * W
    R1, Rm, Ro = B * Cin, B * Cmid, B * Cout

    x = x_ref[...].astype(jnp.float32)        # (R1, HW)
    p = p_ref[...].astype(jnp.float32)        # (Rmax, P)

    # --- unpack the parameter slab (static slices, tiny) ---
    c_dw1, c_dw2 = 0, 10
    c_pw1 = 20
    c_pw2 = 21 + R1
    wdw1 = p[:R1, c_dw1:c_dw1 + 9]
    bdw1 = p[:R1, c_dw1 + 9:c_dw1 + 10]
    wdw2 = p[:Rm, c_dw2:c_dw2 + 9]
    bdw2 = p[:Rm, c_dw2 + 9:c_dw2 + 10]
    wpw1 = p[:Rm, c_pw1:c_pw1 + R1]           # block-diag kron(I_B, Wpw1)
    bpw1 = p[:Rm, c_pw1 + R1:c_pw1 + R1 + 1]
    wpw2 = p[:Ro, c_pw2:c_pw2 + Rm]           # block-diag kron(I_B, Wpw2)
    bpw2 = p[:Ro, c_pw2 + Rm:c_pw2 + Rm + 1]

    # --- boundary masks, computed once per grid step (lane-dense) ---
    lane = lax.broadcasted_iota(jnp.int32, (1, HW), 1)
    col = lane % W                            # W is a power of two here; for general
                                              # W precompute masks host-side.
    mask_l = (col != 0).astype(jnp.float32)           # kills dx == -1 at x == 0
    mask_r = (col != (W - 1)).astype(jnp.float32)     # kills dx == +1 at x == W-1
    mask_t = (lane >= W).astype(jnp.float32)          # kills dy == -1 at y == 0
    mask_b = (lane < (HW - W)).astype(jnp.float32)    # kills dy == +1 at y == H-1

    def dwconv3x3(v, w):
        """Depthwise 3x3, stride 1, zero pad 1, on (R, HW) rows via lane rolls.

        Tap (dy, dx) needs v[i + dy*W + dx]; pltpu.roll(v, s)[i] = v[i - s], so
        each tap is a static roll by -(dy*W + dx) plus boundary masking.  Row
        masks are applied once to the pre-rolled dy = +-1 variants (the lane
        positions where that differs from exact masking are exactly the ones the
        column masks zero anyway).
        """
        v_up = pltpu.roll(v, shift=W % HW, axis=1) * mask_t          # source row y-1
        v_dn = pltpu.roll(v, shift=(-W) % HW, axis=1) * mask_b       # source row y+1
        rows = (v_up, v, v_dn)                                       # dy = -1, 0, +1
        acc = jnp.zeros_like(v)
        for dxi, dx in enumerate((-1, 0, 1)):
            part = jnp.zeros_like(v)
            for dyi in range(3):
                k = dyi * 3 + dxi                                    # (dy+1)*3 + (dx+1)
                src = rows[dyi]
                shifted = pltpu.roll(src, shift=(-dx) % HW, axis=1) if dx != 0 else src
                part = part + shifted * w[:, k:k + 1]
            if dx == -1:
                part = part * mask_l
            elif dx == 1:
                part = part * mask_r
            acc = acc + part
        return acc

    # ---- stage 1: DSC(in -> mid) + GELU ----
    h = dwconv3x3(x, wdw1) + bdw1                                    # (R1, HW)
    h = jnp.dot(wpw1, h, preferred_element_type=jnp.float32) + bpw1  # (Rm, HW) on MXU
    h = _gelu_exact(h)

    # ---- stage 2: DSC(mid -> out) + GELU (mid activation never leaves VMEM) ----
    y = dwconv3x3(h, wdw2) + bdw2                                    # (Rm, HW)
    y = jnp.dot(wpw2, y, preferred_element_type=jnp.float32) + bpw2  # (Ro, HW) on MXU
    y = _gelu_exact(y)

    out_ref[...] = y.astype(out_ref.dtype)                           # lane-dense store


def _pack_params(params, B, Cin, Cmid, Cout):
    """Pack all weights/biases for a B-batch tile into one lane-dense f32 slab.

    Columns: [dw1 taps(9) | dw1 bias | dw2 taps(9) | dw2 bias |
              pw1 block-diag (B*Cin) | pw1 bias | pw2 block-diag (B*Cmid) | pw2 bias]
    """
    R1, Rm, Ro = B * Cin, B * Cmid, B * Cout
    Rmax = max(R1, Rm, Ro)
    f32 = jnp.float32

    def padr(a, rows):
        return jnp.pad(a, ((0, Rmax - rows), (0, 0)))

    dw1 = padr(jnp.concatenate([jnp.tile(params["wdw1"].astype(f32), (B, 1)),
                                jnp.tile(params["bdw1"].astype(f32), (B, 1))], axis=1), R1)
    dw2 = padr(jnp.concatenate([jnp.tile(params["wdw2"].astype(f32), (B, 1)),
                                jnp.tile(params["bdw2"].astype(f32), (B, 1))], axis=1), Rm)
    pw1 = padr(jnp.concatenate([jnp.kron(jnp.eye(B, dtype=f32), params["wpw1"].astype(f32)),
                                jnp.tile(params["bpw1"].astype(f32), (B, 1))], axis=1), Rm)
    pw2 = padr(jnp.concatenate([jnp.kron(jnp.eye(B, dtype=f32), params["wpw2"].astype(f32)),
                                jnp.tile(params["bpw2"].astype(f32), (B, 1))], axis=1), Ro)
    return jnp.concatenate([dw1, dw2, pw1, pw2], axis=1)   # (Rmax, 22 + R1 + Rm)


def bottleneck_pallas(x_rows, slab, *, H, W, B, Cin, Cmid, Cout):
    """x_rows: (B*Cin, H*W) -> (B*Cout, H*W), single fused pallas_call."""
    HW = H * W
    R1, Ro = B * Cin, B * Cout
    kern = functools.partial(bottleneck_kernel, H=H, W=W, B=B,
                             Cin=Cin, Cmid=Cmid, Cout=Cout)
    # Whole batch in one grid step (fills vregs, no per-step overhead).  For larger
    # N/H*W, split the batch axis into tiles here and use CORE_PARALLEL on v7x.
    return pl.pallas_call(
        kern,
        out_shape=jax.ShapeDtypeStruct((Ro, HW), x_rows.dtype),
        grid=(1,),
        in_specs=[
            pl.BlockSpec((R1, HW), lambda t: (t, 0)),
            pl.BlockSpec(slab.shape, lambda t: (0, 0)),
        ],
        out_specs=pl.BlockSpec((Ro, HW), lambda t: (t, 0)),
        compiler_params=pltpu.CompilerParams(
            dimension_semantics=("arbitrary",),
            vmem_limit_bytes=32 * 1024 * 1024),
    )(x_rows, slab)


@jax.jit
def bottleneck_forward(x_nchw, params):
    N, Cin, H, W = x_nchw.shape
    Cmid = params["wpw1"].shape[0]
    Cout = params["wpw2"].shape[0]
    x_rows = x_nchw.reshape(N * Cin, H * W)        # free reshape: no transpose, no pad
    slab = _pack_params(params, N, Cin, Cmid, Cout)
    y = bottleneck_pallas(x_rows, slab, H=H, W=W, B=N, Cin=Cin, Cmid=Cmid, Cout=Cout)
    return y.reshape(N, Cout, H, W)


def init_bottleneck_params(key, in_channels, out_channels, mid_channels=None):
    """Deterministic synthetic parameters (shapes derived from the PyTorch module)."""
    if not mid_channels:
        mid_channels = out_channels
    ks = jax.random.split(key, 8)

    def mk(k, shape, scale=0.1):
        return (scale * jax.random.normal(k, shape)).astype(jnp.float32)

    return {
        # DSC 1: depthwise (Cin,1,3,3)->(Cin,9), bias (Cin,1); pointwise (Cmid,Cin), bias (Cmid,1)
        "wdw1": mk(ks[0], (in_channels, 9)),
        "bdw1": mk(ks[1], (in_channels, 1)),
        "wpw1": mk(ks[2], (mid_channels, in_channels)),
        "bpw1": mk(ks[3], (mid_channels, 1)),
        # DSC 2
        "wdw2": mk(ks[4], (mid_channels, 9)),
        "bdw2": mk(ks[5], (mid_channels, 1)),
        "wpw2": mk(ks[6], (out_channels, mid_channels)),
        "bpw2": mk(ks[7], (out_channels, 1)),
    }


# ---------- pure-JAX reference (for correctness check) ----------
def _ref_dsc(x_nchw, wdw, bdw, wpw, bpw):
    C = x_nchw.shape[1]
    wd = wdw.reshape(C, 1, 3, 3)
    y = lax.conv_general_dilated(
        x_nchw, wd, window_strides=(1, 1), padding=((1, 1), (1, 1)),
        dimension_numbers=("NCHW", "OIHW", "NCHW"), feature_group_count=C)
    y = y + bdw.reshape(1, C, 1, 1)
    Cout = wpw.shape[0]
    wp = wpw.reshape(Cout, C, 1, 1)
    y = lax.conv_general_dilated(
        y, wp, window_strides=(1, 1), padding=((0, 0), (0, 0)),
        dimension_numbers=("NCHW", "OIHW", "NCHW"))
    return y + bpw.reshape(1, Cout, 1, 1)


def bottleneck_reference(x, params):
    y = _gelu_exact(_ref_dsc(x, params["wdw1"], params["bdw1"],
                             params["wpw1"], params["bpw1"]))
    y = _gelu_exact(_ref_dsc(y, params["wdw2"], params["bdw2"],
                             params["wpw2"], params["bpw2"]))
    return y


if __name__ == "__main__":
    key = jax.random.PRNGKey(0)
    k_x, k_p = jax.random.split(key)

    N, C_in, H, W = 2, 4, 16, 16
    C_out = 4  # mid_channels defaults to out_channels

    x = jax.random.normal(k_x, (N, C_in, H, W), dtype=jnp.float32)
    params = init_bottleneck_params(k_p, C_in, C_out)

    out = bottleneck_forward(x, params)
    jax.block_until_ready(out)

    assert out.shape == (N, C_out, H, W), out.shape
    assert out.dtype == jnp.float32

    ref = bottleneck_reference(x, params)
    err = float(jnp.max(jnp.abs(out - ref)))
    assert jnp.allclose(out, ref, atol=1e-3, rtol=1e-3), f"max abs err = {err}"

    print("KERNEL_OK")
</pallas_src>

<mosaic_0001>
module attributes {stable_mosaic.version = 11 : i64} {
  func.func @bottleneck_kernel(%arg0: i32, %arg1: memref<8x256xf32, #tpu.memory_space<vmem>>, %arg2: memref<8x38xf32, #tpu.memory_space<vmem>>, %arg3: memref<8x256xf32, #tpu.memory_space<vmem>>) attributes {dimension_semantics = [#tpu.dimension_semantics<arbitrary>], iteration_bounds = array<i64: 1>, scalar_prefetch = 0 : i64, scratch_operands = 0 : i64, tpu.core_type = #tpu.core_type<tc>, window_params = [{transform_indices = @transform_0, window_bounds = array<i64: 8, 256>}, {pipeline_mode = #tpu.pipeline_mode<synchronous>, transform_indices = @transform_1, window_bounds = array<i64: 8, 38>}, {transform_indices = @transform_2, window_bounds = array<i64: 8, 256>}]} {
    %c0 = arith.constant 0 : index
    %c0_0 = arith.constant 0 : index
    %0 = vector.load %arg1[%c0, %c0_0] : memref<8x256xf32, #tpu.memory_space<vmem>>, vector<8x256xf32>
    %c0_1 = arith.constant 0 : index
    %c0_2 = arith.constant 0 : index
    %1 = vector.load %arg2[%c0_1, %c0_2] : memref<8x38xf32, #tpu.memory_space<vmem>>, vector<8x38xf32>
    %2 = vector.extract_strided_slice %1 {offsets = [0, 0], sizes = [8, 9], strides = [1, 1]} : vector<8x38xf32> to vector<8x9xf32>
    %3 = vector.extract_strided_slice %1 {offsets = [0, 9], sizes = [8, 1], strides = [1, 1]} : vector<8x38xf32> to vector<8x1xf32>
    %4 = vector.extract_strided_slice %1 {offsets = [0, 10], sizes = [8, 9], strides = [1, 1]} : vector<8x38xf32> to vector<8x9xf32>
    %5 = vector.extract_strided_slice %1 {offsets = [0, 19], sizes = [8, 1], strides = [1, 1]} : vector<8x38xf32> to vector<8x1xf32>
    %6 = vector.extract_strided_slice %1 {offsets = [0, 20], sizes = [8, 8], strides = [1, 1]} : vector<8x38xf32> to vector<8x8xf32>
    %7 = vector.extract_strided_slice %1 {offsets = [0, 28], sizes = [8, 1], strides = [1, 1]} : vector<8x38xf32> to vector<8x1xf32>
    %8 = vector.extract_strided_slice %1 {offsets = [0, 29], sizes = [8, 8], strides = [1, 1]} : vector<8x38xf32> to vector<8x8xf32>
    %9 = vector.extract_strided_slice %1 {offsets = [0, 37], sizes = [8, 1], strides = [1, 1]} : vector<8x38xf32> to vector<8x1xf32>
    %10 = tpu.iota {dimensions = array<i32: 1>} : vector<1x256xi32>
    %c16_i32 = arith.constant 16 : i32
    %c0_i32 = arith.constant 0 : i32
    %11 = arith.cmpi eq, %c16_i32, %c0_i32 : i32
    %c1_i32 = arith.constant 1 : i32
    %12 = arith.select %11, %c1_i32, %c16_i32 : i32
    %13 = vector.broadcast %12 : i32 to vector<1x256xi32>
    %14 = arith.remsi %10, %13 : vector<1x256xi32>
    %c0_i32_3 = arith.constant 0 : i32
    %15 = vector.broadcast %c0_i32_3 : i32 to vector<1x256xi32>
    %16 = arith.cmpi ne, %14, %15 : vector<1x256xi32>
    %c0_i32_4 = arith.constant 0 : i32
    %17 = vector.broadcast %c0_i32_4 : i32 to vector<1x256xi32>
    %18 = arith.cmpi slt, %14, %17 : vector<1x256xi32>
    %c0_i32_5 = arith.constant 0 : i32
    %19 = arith.cmpi slt, %12, %c0_i32_5 : i32
    %20 = vector.broadcast %19 : i1 to vector<1x256xi1>
    %21 = vector.broadcast %20 : vector<1x256xi1> to vector<1x256xi1>
    %22 = arith.xori %18, %21 : vector<1x256xi1>
    %23 = arith.andi %22, %16 : vector<1x256xi1>
    %24 = vector.broadcast %12 : i32 to vector<1x256xi32>
    %25 = arith.addi %14, %24 : vector<1x256xi32>
    %26 = arith.select %23, %25, %14 : vector<1x256xi1>, vector<1x256xi32>
    %c0_i32_6 = arith.constant 0 : i32
    %27 = vector.broadcast %c0_i32_6 : i32 to vector<1x256xi32>
    %28 = arith.cmpi ne, %26, %27 : vector<1x256xi32>
    %29 = arith.extui %28 : vector<1x256xi1> to vector<1x256xi32>
    %30 = arith.sitofp %29 : vector<1x256xi32> to vector<1x256xf32>
    %c15_i32 = arith.constant 15 : i32
    %31 = vector.broadcast %c15_i32 : i32 to vector<1x256xi32>
    %32 = arith.cmpi ne, %26, %31 : vector<1x256xi32>
    %33 = arith.extui %32 : vector<1x256xi1> to vector<1x256xi32>
    %34 = arith.sitofp %33 : vector<1x256xi32> to vector<1x256xf32>
    %c16_i32_7 = arith.constant 16 : i32
    %35 = vector.broadcast %c16_i32_7 : i32 to vector<1x256xi32>
    %36 = arith.cmpi sge, %10, %35 : vector<1x256xi32>
    %37 = arith.extui %36 : vector<1x256xi1> to vector<1x256xi32>
    %38 = arith.sitofp %37 : vector<1x256xi32> to vector<1x256xf32>
    %c240_i32 = arith.constant 240 : i32
    %39 = vector.broadcast %c240_i32 : i32 to vector<1x256xi32>
    %40 = arith.cmpi slt, %10, %39 : vector<1x256xi32>
    %41 = arith.extui %40 : vector<1x256xi1> to vector<1x256xi32>
    %42 = arith.sitofp %41 : vector<1x256xi32> to vector<1x256xf32>
    %c16_i32_8 = arith.constant 16 : i32
    %43 = tpu.dynamic_rotate %0 by %c16_i32_8 dim 1 : vector<8x256xf32>, i32 -> vector<8x256xf32>
    %44 = vector.broadcast %38 : vector<1x256xf32> to vector<8x256xf32>
    %45 = arith.mulf %43, %44 : vector<8x256xf32>
    %c240_i32_9 = arith.constant 240 : i32
    %46 = tpu.dynamic_rotate %0 by %c240_i32_9 dim 1 : vector<8x256xf32>, i32 -> vector<8x256xf32>
    %47 = vector.broadcast %42 : vector<1x256xf32> to vector<8x256xf32>
    %48 = arith.mulf %46, %47 : vector<8x256xf32>
    %cst = arith.constant 0.000000e+00 : f32
    %49 = vector.broadcast %cst : f32 to vector<8x256xf32>
    %cst_10 = arith.constant 0.000000e+00 : f32
    %50 = vector.broadcast %cst_10 : f32 to vector<8x256xf32>
    %c1_i32_11 = arith.constant 1 : i32
    %51 = tpu.dynamic_rotate %45 by %c1_i32_11 dim 1 : vector<8x256xf32>, i32 -> vector<8x256xf32>
    %52 = vector.extract_strided_slice %2 {offsets = [0, 0], sizes = [8, 1], strides = [1, 1]} : vector<8x9xf32> to vector<8x1xf32>
    %53 = vector.broadcast %52 : vector<8x1xf32> to vector<8x256xf32>
    %54 = arith.mulf %51, %53 : vector<8x256xf32>
    %55 = arith.addf %50, %54 : vector<8x256xf32>
    %c1_i32_12 = arith.constant 1 : i32
    %56 = tpu.dynamic_rotate %0 by %c1_i32_12 dim 1 : vector<8x256xf32>, i32 -> vector<8x256xf32>
    %57 = vector.extract_strided_slice %2 {offsets = [0, 3], sizes = [8, 1], strides = [1, 1]} : vector<8x9xf32> to vector<8x1xf32>
    %58 = vector.broadcast %57 : vector<8x1xf32> to vector<8x256xf32>
    %59 = arith.mulf %56, %58 : vector<8x256xf32>
    %60 = arith.addf %55, %59 : vector<8x256xf32>
    %c1_i32_13 = arith.constant 1 : i32
    %61 = tpu.dynamic_rotate %48 by %c1_i32_13 dim 1 : vector<8x256xf32>, i32 -> vector<8x256xf32>
    %62 = vector.extract_strided_slice %2 {offsets = [0, 6], sizes = [8, 1], strides = [1, 1]} : vector<8x9xf32> to vector<8x1xf32>
    %63 = vector.broadcast %62 : vector<8x1xf32> to vector<8x256xf32>
    %64 = arith.mulf %61, %63 : vector<8x256xf32>
    %65 = arith.addf %60, %64 : vector<8x256xf32>
    %66 = vector.broadcast %30 : vector<1x256xf32> to vector<8x256xf32>
    %67 = arith.mulf %65, %66 : vector<8x256xf32>
    %68 = arith.addf %49, %67 : vector<8x256xf32>
    %cst_14 = arith.constant 0.000000e+00 : f32
    %69 = vector.broadcast %cst_14 : f32 to vector<8x256xf32>
    %70 = vector.extract_strided_slice %2 {offsets = [0, 1], sizes = [8, 1], strides = [1, 1]} : vector<8x9xf32> to vector<8x1xf32>
    %71 = vector.broadcast %70 : vector<8x1xf32> to vector<8x256xf32>
    %72 = arith.mulf %45, %71 : vector<8x256xf32>
    %73 = arith.addf %69, %72 : vector<8x256xf32>
    %74 = vector.extract_strided_slice %2 {offsets = [0, 4], sizes = [8, 1], strides = [1, 1]} : vector<8x9xf32> to vector<8x1xf32>
    %75 = vector.broadcast %74 : vector<8x1xf32> to vector<8x256xf32>
    %76 = arith.mulf %0, %75 : vector<8x256xf32>
    %77 = arith.addf %73, %76 : vector<8x256xf32>
    %78 = vector.extract_strided_slice %2 {offsets = [0, 7], sizes = [8, 1], strides = [1, 1]} : vector<8x9xf32> to vector<8x1xf32>
    %79 = vector.broadcast %78 : vector<8x1xf32> to vector<8x256xf32>
    %80 = arith.mulf %48, %79 : vector<8x256xf32>
    %81 = arith.addf %77, %80 : vector<8x256xf32>
    %82 = arith.addf %68, %81 : vector<8x256xf32>
    %cst_15 = arith.constant 0.000000e+00 : f32
    %83 = vector.broadcast %cst_15 : f32 to vector<8x256xf32>
    %c255_i32 = arith.constant 255 : i32
    %84 = tpu.dynamic_rotate %45 by %c255_i32 dim 1 : vector<8x256xf32>, i32 -> vector<8x256xf32>
    %85 = vector.extract_strided_slice %2 {offsets = [0, 2], sizes = [8, 1], strides = [1, 1]} : vector<8x9xf32> to vector<8x1xf32>
    %86 = vector.broadcast %85 : vector<8x1xf32> to vector<8x256xf32>
    %87 = arith.mulf %84, %86 : vector<8x256xf32>
    %88 = arith.addf %83, %87 : vector<8x256xf32>
    %c255_i32_16 = arith.constant 255 : i32
    %89 = tpu.dynamic_rotate %0 by %c255_i32_16 dim 1 : vector<8x256xf32>, i32 -> vector<8x256xf32>
    %90 = vector.extract_strided_slice %2 {offsets = [0, 5], sizes = [8, 1], strides = [1, 1]} : vector<8x9xf32> to vector<8x1xf32>
    %91 = vector.broadcast %90 : vector<8x1xf32> to vector<8x256xf32>
    %92 = arith.mulf %89, %91 : vector<8x256xf32>
    %93 = arith.addf %88, %92 : vector<8x256xf32>
    %c255_i32_17 = arith.constant 255 : i32
    %94 = tpu.dynamic_rotate %48 by %c255_i32_17 dim 1 : vector<8x256xf32>, i32 -> vector<8x256xf32>
    %95 = vector.extract_strided_slice %2 {offsets = [0, 8], sizes = [8, 1], strides = [1, 1]} : vector<8x9xf32> to vector<8x1xf32>
    %96 = vector.broadcast %95 : vector<8x1xf32> to vector<8x256xf32>
    %97 = arith.mulf %94, %96 : vector<8x256xf32>
    %98 = arith.addf %93, %97 : vector<8x256xf32>
    %99 = vector.broadcast %34 : vector<1x256xf32> to vector<8x256xf32>
    %100 = arith.mulf %98, %99 : vector<8x256xf32>
    %101 = arith.addf %82, %100 : vector<8x256xf32>
    %102 = vector.broadcast %3 : vector<8x1xf32> to vector<8x256xf32>
    %103 = arith.addf %101, %102 : vector<8x256xf32>
    %cst_18 = arith.constant dense<0.000000e+00> : vector<8x256xf32>
    %104 = tpu.matmul %6, %103, %cst_18 {dimension_numbers = #tpu.dot_dimension_numbers<[1], [0], [0], [1], [0, 0, 1, 1], [], []>} : vector<8x8xf32>, vector<8x256xf32>, vector<8x256xf32> -> vector<8x256xf32>
    %105 = vector.broadcast %7 : vector<8x1xf32> to vector<8x256xf32>
    %106 = arith.addf %104, %105 : vector<8x256xf32>
    %cst_19 = arith.constant 5.000000e-01 : f32
    %107 = vector.broadcast %cst_19 : f32 to vector<8x256xf32>
    %108 = arith.mulf %107, %106 : vector<8x256xf32>
    %cst_20 = arith.constant 0.707106769 : f32
    %109 = vector.broadcast %cst_20 : f32 to vector<8x256xf32>
    %110 = arith.mulf %106, %109 : vector<8x256xf32>
    %111 = math.erf %110 : vector<8x256xf32>
    %cst_21 = arith.constant 1.000000e+00 : f32
    %112 = vector.broadcast %cst_21 : f32 to vector<8x256xf32>
    %113 = arith.addf %112, %111 : vector<8x256xf32>
    %114 = arith.mulf %108, %113 : vector<8x256xf32>
    %c16_i32_22 = arith.constant 16 : i32
    %115 = tpu.dynamic_rotate %114 by %c16_i32_22 dim 1 : vector<8x256xf32>, i32 -> vector<8x256xf32>
    %116 = vector.broadcast %38 : vector<1x256xf32> to vector<8x256xf32>
    %117 = arith.mulf %115, %116 : vector<8x256xf32>
    %c240_i32_23 = arith.constant 240 : i32
    %118 = tpu.dynamic_rotate %114 by %c240_i32_23 dim 1 : vector<8x256xf32>, i32 -> vector<8x256xf32>
    %119 = vector.broadcast %42 : vector<1x256xf32> to vector<8x256xf32>
    %120 = arith.mulf %118, %119 : vector<8x256xf32>
    %cst_24 = arith.constant 0.000000e+00 : f32
    %121 = vector.broadcast %cst_24 : f32 to vector<8x256xf32>
    %cst_25 = arith.constant 0.000000e+00 : f32
    %122 = vector.broadcast %cst_25 : f32 to vector<8x256xf32>
    %c1_i32_26 = arith.constant 1 : i32
    %123 = tpu.dynamic_rotate %117 by %c1_i32_26 dim 1 : vector<8x256xf32>, i32 -> vector<8x256xf32>
    %124 = vector.extract_strided_slice %4 {offsets = [0, 0], sizes = [8, 1], strides = [1, 1]} : vector<8x9xf32> to vector<8x1xf32>
    %125 = vector.broadcast %124 : vector<8x1xf32> to vector<8x256xf32>
    %126 = arith.mulf %123, %125 : vector<8x256xf32>
    %127 = arith.addf %122, %126 : vector<8x256xf32>
    %c1_i32_27 = arith.constant 1 : i32
    %128 = tpu.dynamic_rotate %114 by %c1_i32_27 dim 1 : vector<8x256xf32>, i32 -> vector<8x256xf32>
    %129 = vector.extract_strided_slice %4 {offsets = [0, 3], sizes = [8, 1], strides = [1, 1]} : vector<8x9xf32> to vector<8x1xf32>
    %130 = vector.broadcast %129 : vector<8x1xf32> to vector<8x256xf32>
    %131 = arith.mulf %128, %130 : vector<8x256xf32>
    %132 = arith.addf %127, %131 : vector<8x256xf32>
    %c1_i32_28 = arith.constant 1 : i32
    %133 = tpu.dynamic_rotate %120 by %c1_i32_28 dim 1 : vector<8x256xf32>, i32 -> vector<8x256xf32>
    %134 = vector.extract_strided_slice %4 {offsets = [0, 6], sizes = [8, 1], strides = [1, 1]} : vector<8x9xf32> to vector<8x1xf32>
    %135 = vector.broadcast %134 : vector<8x1xf32> to vector<8x256xf32>
    %136 = arith.mulf %133, %135 : vector<8x256xf32>
    %137 = arith.addf %132, %136 : vector<8x256xf32>
    %138 = vector.broadcast %30 : vector<1x256xf32> to vector<8x256xf32>
    %139 = arith.mulf %137, %138 : vector<8x256xf32>
    %140 = arith.addf %121, %139 : vector<8x256xf32>
    %cst_29 = arith.constant 0.000000e+00 : f32
    %141 = vector.broadcast %cst_29 : f32 to vector<8x256xf32>
    %142 = vector.extract_strided_slice %4 {offsets = [0, 1], sizes = [8, 1], strides = [1, 1]} : vector<8x9xf32> to vector<8x1xf32>
    %143 = vector.broadcast %142 : vector<8x1xf32> to vector<8x256xf32>
    %144 = arith.mulf %117, %143 : vector<8x256xf32>
    %145 = arith.addf %141, %144 : vector<8x256xf32>
    %146 = vector.extract_strided_slice %4 {offsets = [0, 4], sizes = [8, 1], strides = [1, 1]} : vector<8x9xf32> to vector<8x1xf32>
    %147 = vector.broadcast %146 : vector<8x1xf32> to vector<8x256xf32>
    %148 = arith.mulf %114, %147 : vector<8x256xf32>
    %149 = arith.addf %145, %148 : vector<8x256xf32>
    %150 = vector.extract_strided_slice %4 {offsets = [0, 7], sizes = [8, 1], strides = [1, 1]} : vector<8x9xf32> to vector<8x1xf32>
    %151 = vector.broadcast %150 : vector<8x1xf32> to vector<8x256xf32>
    %152 = arith.mulf %120, %151 : vector<8x256xf32>
    %153 = arith.addf %149, %152 : vector<8x256xf32>
    %154 = arith.addf %140, %153 : vector<8x256xf32>
    %cst_30 = arith.constant 0.000000e+00 : f32
    %155 = vector.broadcast %cst_30 : f32 to vector<8x256xf32>
    %c255_i32_31 = arith.constant 255 : i32
    %156 = tpu.dynamic_rotate %117 by %c255_i32_31 dim 1 : vector<8x256xf32>, i32 -> vector<8x256xf32>
    %157 = vector.extract_strided_slice %4 {offsets = [0, 2], sizes = [8, 1], strides = [1, 1]} : vector<8x9xf32> to vector<8x1xf32>
    %158 = vector.broadcast %157 : vector<8x1xf32> to vector<8x256xf32>
    %159 = arith.mulf %156, %158 : vector<8x256xf32>
    %160 = arith.addf %155, %159 : vector<8x256xf32>
    %c255_i32_32 = arith.constant 255 : i32
    %161 = tpu.dynamic_rotate %114 by %c255_i32_32 dim 1 : vector<8x256xf32>, i32 -> vector<8x256xf32>
    %162 = vector.extract_strided_slice %4 {offsets = [0, 5], sizes = [8, 1], strides = [1, 1]} : vector<8x9xf32> to vector<8x1xf32>
    %163 = vector.broadcast %162 : vector<8x1xf32> to vector<8x256xf32>
    %164 = arith.mulf %161, %163 : vector<8x256xf32>
    %165 = arith.addf %160, %164 : vector<8x256xf32>
    %c255_i32_33 = arith.constant 255 : i32
    %166 = tpu.dynamic_rotate %120 by %c255_i32_33 dim 1 : vector<8x256xf32>, i32 -> vector<8x256xf32>
    %167 = vector.extract_strided_slice %4 {offsets = [0, 8], sizes = [8, 1], strides = [1, 1]} : vector<8x9xf32> to vector<8x1xf32>
    %168 = vector.broadcast %167 : vector<8x1xf32> to vector<8x256xf32>
    %169 = arith.mulf %166, %168 : vector<8x256xf32>
    %170 = arith.addf %165, %169 : vector<8x256xf32>
    %171 = vector.broadcast %34 : vector<1x256xf32> to vector<8x256xf32>
    %172 = arith.mulf %170, %171 : vector<8x256xf32>
    %173 = arith.addf %154, %172 : vector<8x256xf32>
    %174 = vector.broadcast %5 : vector<8x1xf32> to vector<8x256xf32>
    %175 = arith.addf %173, %174 : vector<8x256xf32>
    %cst_34 = arith.constant dense<0.000000e+00> : vector<8x256xf32>
    %176 = tpu.matmul %8, %175, %cst_34 {dimension_numbers = #tpu.dot_dimension_numbers<[1], [0], [0], [1], [0, 0, 1, 1], [], []>} : vector<8x8xf32>, vector<8x256xf32>, vector<8x256xf32> -> vector<8x256xf32>
    %177 = vector.broadcast %9 : vector<8x1xf32> to vector<8x256xf32>
    %178 = arith.addf %176, %177 : vector<8x256xf32>
    %cst_35 = arith.constant 5.000000e-01 : f32
    %179 = vector.broadcast %cst_35 : f32 to vector<8x256xf32>
    %180 = arith.mulf %179, %178 : vector<8x256xf32>
    %cst_36 = arith.constant 0.707106769 : f32
    %181 = vector.broadcast %cst_36 : f32 to vector<8x256xf32>
    %182 = arith.mulf %178, %181 : vector<8x256xf32>
    %183 = math.erf %182 : vector<8x256xf32>
    %cst_37 = arith.constant 1.000000e+00 : f32
    %184 = vector.broadcast %cst_37 : f32 to vector<8x256xf32>
    %185 = arith.addf %184, %183 : vector<8x256xf32>
    %186 = arith.mulf %180, %185 : vector<8x256xf32>
    %c0_38 = arith.constant 0 : index
    %c0_39 = arith.constant 0 : index
    %187 = vector.load %arg3[%c0_38, %c0_39] : memref<8x256xf32, #tpu.memory_space<vmem>>, vector<8x256xf32>
    tpu.vector_store %arg3[%c0_38, %c0_39], %186 {strides = array<i32>} : memref<8x256xf32, #tpu.memory_space<vmem>>, vector<8x256xf32>,
    return
  }
  func.func @transform_0(%arg0: i32) -> (i32, i32) {
    %c0_i32 = arith.constant 0 : i32
    %c0_i32_0 = arith.constant 0 : i32
    return %arg0, %c0_i32 : i32, i32
  }
  func.func @transform_1(%arg0: i32) -> (i32, i32) {
    %c0_i32 = arith.constant 0 : i32
    %c0_i32_0 = arith.constant 0 : i32
    %c0_i32_1 = arith.constant 0 : i32
    return %c0_i32, %c0_i32_0 : i32, i32
  }
  func.func @transform_2(%arg0: i32) -> (i32, i32) {
    %c0_i32 = arith.constant 0 : i32
    %c0_i32_0 = arith.constant 0 : i32
    return %arg0, %c0_i32 : i32, i32
  }
}

</mosaic_0001>

<bundles_post_ra>
// kernel: bottleneck_forward.1
= control target key start
LH: loop header
LB: loop body
LE: loop exit
PB: predicated region body
PF: predicated region fallthrough
CT: control target
= control target key end

     0   :  { %v603_v1 = vmov 3   ;;  %v604_v2 = vmov 0   ;;  %s605_s11 = smov 112   ;;  %s606_s12 = smov 16   ;;  %v607_v4 = vmov 0.0   ;;  %v608_v6 = vmov 6   ;;  %s874_s0 = inlined_call_operand.vmem [shape: f32[8,256], index: 0, kind: input, shape index: {}]   ;;  %s875_s1 = inlined_call_operand.vmem [shape: f32[8,38], index: 1, kind: input, shape index: {}]   ;;  %s876_s2 = inlined_call_operand.vmem [shape: f32[8,256], index: 2, kind: output, shape index: {}]  }
   0x1   :  { %v650_v0 = vld [vmem:[%s874_s0] sm:$0xff]  ;;  %573 = vset.pattern.permute.xlu1 %v603_v1  ;;  %572 = vset.pattern.permute.xlu0 %v604_v2  ;;  %v659_v3 = vld [vmem:[%s874_s0 + $0x8] sm:$0xff]  ;;  %v609_v7 = vmov 1   ;;  %v610_v8 = vmov 4   ;;  %v611_v9 = vmov 5   ;;  %s612_s0 = smov 1   ;;  %v14_v14 = vlaneseq }
   0x2   :  { %74 = vrot.lane.b32.xlu1 %v650_v0, %s605_s11  ;;  %65 = vrot.lane.b32.xlu0 %v650_v0, %s606_s12  ;;  %v670_v5 = vld [vmem:[%s875_s1] sm:$0xff]  ;;  %v613_v10 = vmov 2   ;;  %v614_v11 = vmov 7   ;;  %v615_v12 = vmov 8   ;;  %s616_s1 = smov 127   ;;  %v617_v13 = vmov 9  }
   0x3   :  { %283 = vmatprep.mubr.f32.mxu0 %v607_v4  ;;  %512 = vmatprep.mubr.f32.mxu1 %v607_v4  ;;  %v689_v15 = vand.u32 127, %v14_v14  ;;  %s618_s17 = smov 108   ;;  %v619_v35 = vmov 28   ;;  %vm216_vm10 = vcmask 64512   ;;  %s630_s18 = smov 99  }
   0x5   :  { %v692_v16 = vadd.s32 128, %v689_v15  ;;  %vm78_vm1 = vcmp.lt.s32.totalorder %v689_v15, 112  ;;  %vm69_vm2 = vcmp.lt.s32.totalorder %v689_v15, 16  ;;  %vm53_vm3 = vcmp.ge.s32.totalorder %v689_v15, 16 }
   0x6   :  { %76 = vrot.lane.b32.xlu1 %v659_v3, %s605_s11  ;;  %67 = vrot.lane.b32.xlu0 %v659_v3, %s606_s12  ;;  %v709_v25 = vsel %vm53_vm3, 1.0, %v607_v4  ;;  %vm87_vm4 = vcmp.lt.s32.totalorder %v689_v15, 1  ;;  %vm161_vm5 = vcmp.lt.s32.totalorder %v689_v15, 127 }
   0x7   :  { %vm60_vm0 = vcmp.lt.s32.totalorder %v692_v16, 240  ;;  %v28_v2 = vand.u32 15, %v692_v16 }
   0x8   :  { %v698_v21 = vsel %vm60_vm0, 1.0, %v607_v4 }
   0x9   :  { %vm753_vm6 = vcmp.ne.s32.totalorder %v28_v2, 0  ;;  %vm48_vm8 = vcmp.ne.s32.totalorder %v28_v2, 15 }
   0xa   :  { %106 = vperm.xlu1 %573, %v670_v5   ;;  %92 = vperm.xlu0 %572, %v670_v5  }
   0xe   :  { %574 = vset.pattern.permute.xlu1 %v608_v6  ;;  %575 = vset.pattern.permute.xlu0 %v609_v7 }
   0xf   :  { %120 = vperm.xlu1 %574, %v670_v5   ;;  %132 = vperm.xlu0 %575, %v670_v5  }
  0x13   :  { %576 = vset.pattern.permute.xlu1 %v610_v8  ;;  %578 = vset.pattern.permute.xlu0 %v611_v9 }
  0x14   :  { %140 = vperm.xlu1 %576, %v670_v5   ;;  %179 = vperm.xlu0 %578, %v670_v5  }
  0x18   :  { %99 = vrot.lane.b32.xlu0 %v650_v0, %s612_s0  ;;  %577 = vset.pattern.permute.xlu1 %v613_v10 }
  0x19   :  { %579 = vset.pattern.permute.xlu0 %v614_v11  ;;  %165 = vperm.xlu1 %577, %v670_v5  }
  0x1c   :  { %148 = vperm.xlu0 %579, %v670_v5  }
  0x1d   :  { %101 = vrot.lane.b32.xlu1 %v659_v3, %s612_s0 }
  0x1e   :  { %580 = vset.pattern.permute.xlu1 %v615_v12 }
  0x20   :  { %174 = vrot.lane.b32.xlu0 %v659_v3, %s616_s1 }
  0x21   :  { %193 = vperm.xlu1 %580, %v670_v5  }
  0x25   :  { %172 = vrot.lane.b32.xlu1 %v650_v0, %s616_s1 }
  0x26   :  { %581 = vset.pattern.permute.xlu1 %v617_v13 }
  0x74   :  { %v75_v17 = vpop.permute.xlu1 %74  ;;  %v66_v18 = vpop.permute.xlu0 %65 }
  0x78   :  { %v77_v19 = vpop.permute.xlu1 %76  ;;  %v68_v20 = vpop.permute.xlu0 %67 }
  0x79   :  { %v80_v22 = vsel %vm78_vm1, %v77_v19, %v75_v17  ;;  %v70_v23 = vsel %vm69_vm2, %v66_v18, %v68_v20  ;;  %v71_v26 = vsel %vm69_vm2, %v68_v20, %v66_v18  ;;  %v79_v27 = vsel %vm78_vm1, %v75_v17, %v77_v19 }
  0x7a   :  { %159 = vrot.lane.b32.xlu0 %v70_v23, %s616_s1  ;;  %85 = vrot.lane.b32.xlu1 %v70_v23, %s612_s0  ;;  %v82_v24 = vmul.f32 %v698_v21, %v80_v22  ;;  %v72_v28 = vmul.f32 %v709_v25, %v71_v26 }
  0x7e   :  { %115 = vrot.lane.b32.xlu0 %v82_v24, %s612_s0  ;;  %113 = vrot.lane.b32.xlu1 %v79_v27, %s612_s0 }
  0x82   :  { %188 = vrot.lane.b32.xlu0 %v82_v24, %s616_s1  ;;  %83 = vrot.lane.b32.xlu1 %v72_v28, %s612_s0 }
  0x85   :  { %v93_v29 = vpop.permute.xlu0 %92  ;;  %v107_v30 = vpop.permute.xlu1 %106 }
  0x86   :  { %157 = vrot.lane.b32.xlu1 %v72_v28, %s616_s1  ;;  %214 = vrot.lane.b32.xlu0 %v670_v5, %s618_s17 }
  0x8a   :  { %186 = vrot.lane.b32.xlu1 %v79_v27, %s616_s1  ;;  %v133_v31 = vpop.permute.xlu0 %132  ;;  %v121_v32 = vpop.permute.xlu1 %120 }
  0x8b   :  { %v135_v39 = vmul.f32 %v133_v31, %v72_v28  ;;  %v136_v40 = vmul.f32 %v133_v31, %v70_v23 }
  0x8e   :  { %205 = vperm.xlu1 %581, %v670_v5  }
  0x8f   :  { %v180_v33 = vpop.permute.xlu0 %179  ;;  %v141_v34 = vpop.permute.xlu1 %140 }
  0x90   :  { %v143_v37 = vmul.f32 %v141_v34, %v650_v0  ;;  %v144_v38 = vmul.f32 %v141_v34, %v659_v3  ;;  %v21_v3 = vand.u32 15, %v689_v15 }
  0x92   :  { %582 = vset.pattern.permute.xlu1 %v619_v35  ;;  %v145_v42 = vadd.f32 %v143_v37, %v135_v39  ;;  %v146_v43 = vadd.f32 %v144_v38, %v136_v40  ;;  %vm757_vm7 = vcmp.ne.s32.totalorder %v21_v3, 0  ;;  %vm47_vm9 = vcmp.ne.s32.totalorder %v21_v3, 15 }
  0x93   :  { %v100_v36 = vpop.permute.xlu0 %99  ;;  %211 = vperm.xlu1 %582, %v670_v5   ;;  %v773_v37 = vsel %vm757_vm7, 1.0, %v607_v4  ;;  %v776_v40 = vsel %vm48_vm8, 1.0, %v607_v4 }
  0x94   :  { %v166_v48 = vpop.permute.xlu1 %165 }
  0x97   :  { %v149_v41 = vpop.permute.xlu0 %148 }
  0x98   :  { %v151_v44 = vmul.f32 %v149_v41, %v79_v27  ;;  %v152_v45 = vmul.f32 %v149_v41, %v82_v24  ;;  %v102_v49 = vpop.permute.xlu1 %101  ;;  %v779_v41 = vsel %vm47_vm9, 1.0, %v607_v4 }
  0x99   :  { %v103_v56 = vsel %vm87_vm4, %v100_v36, %v102_v49  ;;  %v104_v57 = vsel %vm87_vm4, %v102_v49, %v100_v36 }
  0x9a   :  { %v727_v46 = vadd.f32 %v151_v44, %v145_v42  ;;  %v154_v47 = vadd.f32 %v152_v45, %v146_v43  ;;  %v109_v0 = vmul.f32 %v107_v30, %v104_v57  ;;  %v110_v1 = vmul.f32 %v107_v30, %v103_v56 }
  0x9b   :  { %v175_v52 = vpop.permute.xlu0 %174  ;;  %v621_v56 = vmov 13  }
  0x9c   :  { %v194_v50 = vpop.permute.xlu1 %193  ;;  %584 = vset.pattern.permute.xlu1 %v621_v56 }
  0xa0   :  { %v173_v51 = vpop.permute.xlu1 %172 }
  0xa1   :  { %v176_v6 = vsel %vm161_vm5, %v173_v51, %v175_v52  ;;  %v177_v7 = vsel %vm161_vm5, %v175_v52, %v173_v51 }
  0xa2   :  { %v182_v23 = vmul.f32 %v180_v33, %v176_v6  ;;  %v183_v24 = vmul.f32 %v180_v33, %v177_v7  ;;  %v768_v33 = vsel %vm753_vm6, 1.0, %v607_v4  ;;  %v620_v4 = vmov 10  }
  0xa3   :  { %583 = vset.pattern.permute.xlu0 %v620_v4 }
  0xec   :  { %v86_v53 = vpop.permute.xlu1 %85  ;;  %v160_v54 = vpop.permute.xlu0 %159 }
  0xf0   :  { %v114_v55 = vpop.permute.xlu1 %113  ;;  %v116_v59 = vpop.permute.xlu0 %115 }
  0xf1   :  { %v117_v8 = vsel %vm87_vm4, %v114_v55, %v116_v59  ;;  %v118_v9 = vsel %vm87_vm4, %v116_v59, %v114_v55 }
  0xf2   :  { %v123_v18 = vmul.f32 %v121_v32, %v118_v9  ;;  %v124_v19 = vmul.f32 %v121_v32, %v117_v8  ;;  %v622_v8 = vmov 11   ;;  %v623_v9 = vmov 16  }
  0xf4   :  { %v84_v58 = vpop.permute.xlu1 %83  ;;  %v189_v26 = vpop.permute.xlu0 %188 }
  0xf5   :  { %v88_v60 = vsel %vm87_vm4, %v84_v58, %v86_v53  ;;  %v89_v61 = vsel %vm87_vm4, %v86_v53, %v84_v58 }
  0xf6   :  { %v95_v62 = vmul.f32 %v93_v29, %v89_v61  ;;  %v96_v63 = vmul.f32 %v93_v29, %v88_v60 }
  0xf8   :  { %v158_v10 = vpop.permute.xlu1 %157  ;;  %v111_v11 = vadd.f32 %v109_v0, %v95_v62  ;;  %v112_v12 = vadd.f32 %v110_v1, %v96_v63  ;;  %v215_v55 = vpop.permute.xlu0 %214 }
  0xf9   :  { %v162_v13 = vsel %vm161_vm5, %v158_v10, %v160_v54  ;;  %v163_v14 = vsel %vm161_vm5, %v160_v54, %v158_v10  ;;  %v624_v10 = vmov 15  }
  0xfa   :  { %v168_v16 = vmul.f32 %v166_v48, %v162_v13  ;;  %v169_v17 = vmul.f32 %v166_v48, %v163_v14  ;;  %v125_v28 = vadd.f32 %v123_v18, %v111_v11  ;;  %v126_v29 = vadd.f32 %v124_v19, %v112_v12 }
  0xfb   :  { %v625_v11 = vmov 14   ;;  %v626_v12 = vmov 17   ;;  %v627_v13 = vmov 12   ;;  %v628_v14 = vmov 18  }
  0xfc   :  { %v187_v27 = vpop.permute.xlu1 %186  ;;  %v184_v32 = vadd.f32 %v182_v23, %v168_v16  ;;  %v185_v34 = vadd.f32 %v183_v24, %v169_v17  ;;  %v128_v42 = vmul.f32 %v768_v33, %v126_v29  ;;  %v127_v43 = vmul.f32 %v773_v37, %v125_v28 }
  0xfd   :  { %v190_v30 = vsel %vm161_vm5, %v187_v27, %v189_v26  ;;  %v191_v31 = vsel %vm161_vm5, %v189_v26, %v187_v27  ;;  %v629_v16 = vmov 19  }
  0xfe   :  { %v196_v35 = vmul.f32 %v194_v50, %v190_v30  ;;  %v197_v36 = vmul.f32 %v194_v50, %v191_v31  ;;  %v156_v48 = vadd.f32 %v154_v47, %v128_v42  ;;  %v155_v49 = vadd.f32 %v727_v46, %v127_v43 }
 0x100   :  { %v198_v38 = vadd.f32 %v196_v35, %v184_v32  ;;  %v199_v39 = vadd.f32 %v197_v36, %v185_v34 }
 0x102   :  { %v201_v44 = vmul.f32 %v776_v40, %v199_v39  ;;  %v200_v45 = vmul.f32 %v779_v41, %v198_v38 }
 0x104   :  { %v203_v50 = vadd.f32 %v201_v44, %v156_v48  ;;  %v202_v51 = vadd.f32 %v200_v45, %v155_v49 }
 0x109   :  { %v206_v52 = vpop.permute.xlu1 %205 }
 0x10a   :  { %v209_v53 = vadd.f32 %v206_v52, %v203_v50  ;;  %v208_v54 = vadd.f32 %v206_v52, %v202_v51 }
 0x10c   :  { %249 = vmatprep.subr.mxu0 %v209_v53 }
 0x10d   :  { %250 = vmatpush1.msra.mxu0 %v208_v54 }
 0x10e   :  { %541 = vmatmul.mubr.msk.f32.vlgmr.msra.gmra.mxu0 %vm216_vm10, %v215_v55  ;;  %v212_v57 = vpop.permute.xlu1 %211 }
 0x1ce   :  { %v285_v58 = vpop.f32.mrf.mxu0 }
 0x1cf   :  { %v286_v47 = vadd.f32 %v285_v58, %v212_v57 }
 0x1d0   :  { %v287_v59 = vpop.f32.mrf.mxu0 }
 0x1d1   :  { %v292_v46 = vmul.f32 0.70710677, %v286_v47  ;;  %v288_v60 = vadd.f32 %v287_v59, %v212_v57  ;;  %v290_v63 = vmul.f32 0.5, %v286_v47 }
 0x1d3   :  { %595 = verf.f32 %v292_v46  ;;  %v293_v61 = vmul.f32 0.70710677, %v288_v60  ;;  %v291_v3 = vmul.f32 0.5, %v288_v60 }
 0x1d5   :  { %597 = verf.f32 %v293_v61 }
 0x1e0   :  { %v596_v62 = vpop.eup %595 }
 0x1e1   :  { %v296_v0 = vadd.f32 1.0, %v596_v62 }
 0x1e2   :  { %v598_v1 = vpop.eup %597 }
 0x1e3   :  { %v787_v2 = vmul.f32 %v296_v0, %v290_v63  ;;  %v297_v6 = vadd.f32 1.0, %v598_v1 }
 0x1e5   :  { %v789_v7 = vmul.f32 %v297_v6, %v291_v3  ;;  %300 = vrot.lane.b32.xlu0 %v787_v2, %s606_s12 }
 0x1e7   :  { %302 = vrot.lane.b32.xlu1 %v789_v7, %s606_s12 }
 0x1e9   :  { %308 = vrot.lane.b32.xlu0 %v787_v2, %s605_s11 }
 0x1eb   :  { %310 = vrot.lane.b32.xlu1 %v789_v7, %s605_s11 }
 0x1ed   :  { %323 = vperm.xlu0 %583, %v670_v5  }
 0x1ef   :  { %337 = vperm.xlu1 %584, %v670_v5  }
 0x1f1   :  { %586 = vset.pattern.permute.xlu0 %v622_v8 }
 0x1f2   :  { %363 = vperm.xlu0 %586, %v670_v5  }
 0x1f3   :  { %585 = vset.pattern.permute.xlu1 %v623_v9 }
 0x1f4   :  { %351 = vperm.xlu1 %585, %v670_v5  }
 0x1f6   :  { %589 = vset.pattern.permute.xlu0 %v624_v10 }
 0x1f7   :  { %409 = vperm.xlu0 %589, %v670_v5  }
 0x1f8   :  { %587 = vset.pattern.permute.xlu1 %v625_v11 }
 0x1f9   :  { %371 = vperm.xlu1 %587, %v670_v5  }
 0x1fb   :  { %330 = vrot.lane.b32.xlu0 %v787_v2, %s612_s0 }
 0x1fc   :  { %590 = vset.pattern.permute.xlu0 %v626_v12 }
 0x1fd   :  { %588 = vset.pattern.permute.xlu1 %v627_v13 }
 0x1fe   :  { %395 = vperm.xlu1 %588, %v670_v5  }
 0x1ff   :  { %379 = vperm.xlu0 %590, %v670_v5  }
 0x202   :  { %591 = vset.pattern.permute.xlu1 %v628_v14 }
 0x203   :  { %423 = vperm.xlu1 %591, %v670_v5   ;;  %404 = vrot.lane.b32.xlu0 %v789_v7, %s616_s1 }
 0x207   :  { %402 = vrot.lane.b32.xlu1 %v787_v2, %s616_s1 }
 0x208   :  { %592 = vset.pattern.permute.xlu1 %v629_v16 }
 0x20b   :  { %332 = vrot.lane.b32.xlu1 %v789_v7, %s612_s0 }
 0x257   :  { %v301_v17 = vpop.permute.xlu0 %300 }
 0x259   :  { %v303_v18 = vpop.permute.xlu1 %302 }
 0x25a   :  { %v304_v19 = vsel %vm69_vm2, %v301_v17, %v303_v18  ;;  %v305_v23 = vsel %vm69_vm2, %v303_v18, %v301_v17 }
 0x25b   :  { %390 = vrot.lane.b32.xlu0 %v304_v19, %s616_s1  ;;  %318 = vrot.lane.b32.xlu1 %v304_v19, %s612_s0  ;;  %v309_v20 = vpop.permute.xlu0 %308  ;;  %v306_v28 = vmul.f32 %v709_v25, %v305_v23  ;;  %v631_v25 = vmov 37  }
 0x25c   :  { %594 = vset.pattern.permute.xlu0 %v631_v25 }
 0x25d   :  { %v311_v22 = vpop.permute.xlu1 %310 }
 0x25e   :  { %v313_v24 = vsel %vm78_vm1, %v311_v22, %v309_v20  ;;  %v312_v26 = vsel %vm78_vm1, %v309_v20, %v311_v22 }
 0x25f   :  { %v315_v27 = vmul.f32 %v698_v21, %v313_v24  ;;  %344 = vrot.lane.b32.xlu1 %v312_v26, %s612_s0 }
 0x261   :  { %346 = vrot.lane.b32.xlu0 %v315_v27, %s612_s0 }
 0x263   :  { %316 = vrot.lane.b32.xlu1 %v306_v28, %s612_s0 }
 0x265   :  { %418 = vrot.lane.b32.xlu0 %v315_v27, %s616_s1 }
 0x267   :  { %388 = vrot.lane.b32.xlu1 %v306_v28, %s616_s1 }
 0x268   :  { %v324_v29 = vpop.permute.xlu0 %323 }
 0x269   :  { %444 = vrot.lane.b32.xlu0 %v670_v5, %s630_s18 }
 0x26a   :  { %v338_v30 = vpop.permute.xlu1 %337 }
 0x26b   :  { %416 = vrot.lane.b32.xlu1 %v312_v26, %s616_s1 }
 0x26d   :  { %v364_v21 = vpop.permute.xlu0 %363 }
 0x26e   :  { %v366_v39 = vmul.f32 %v364_v21, %v306_v28  ;;  %v367_v42 = vmul.f32 %v364_v21, %v304_v19 }
 0x26f   :  { %435 = vperm.xlu1 %592, %v670_v5   ;;  %v352_v31 = vpop.permute.xlu1 %351 }
 0x272   :  { %v410_v32 = vpop.permute.xlu0 %409 }
 0x273   :  { %593 = vset.pattern.permute.xlu1 %v631_v25 }
 0x274   :  { %v372_v34 = vpop.permute.xlu1 %371  ;;  %441 = vperm.xlu1 %593, %v670_v5  }
 0x275   :  { %v374_v36 = vmul.f32 %v372_v34, %v787_v2  ;;  %v375_v38 = vmul.f32 %v372_v34, %v789_v7 }
 0x276   :  { %v331_v35 = vpop.permute.xlu0 %330 }
 0x277   :  { %v376_v44 = vadd.f32 %v374_v36, %v366_v39  ;;  %v377_v45 = vadd.f32 %v375_v38, %v367_v42 }
 0x279   :  { %v396_v52 = vpop.permute.xlu1 %395 }
 0x27a   :  { %v380_v43 = vpop.permute.xlu0 %379 }
 0x27b   :  { %v382_v48 = vmul.f32 %v380_v43, %v312_v26  ;;  %v383_v49 = vmul.f32 %v380_v43, %v315_v27 }
 0x27d   :  { %v384_v50 = vadd.f32 %v382_v48, %v376_v44  ;;  %v385_v51 = vadd.f32 %v383_v49, %v377_v45 }
 0x27e   :  { %v424_v53 = vpop.permute.xlu1 %423  ;;  %v405_v5 = vpop.permute.xlu0 %404 }
 0x282   :  { %v403_v54 = vpop.permute.xlu1 %402 }
 0x283   :  { %v406_v2 = vsel %vm161_vm5, %v403_v54, %v405_v5  ;;  %v407_v3 = vsel %vm161_vm5, %v405_v5, %v403_v54 }
 0x284   :  { %v412_v18 = vmul.f32 %v410_v32, %v406_v2  ;;  %v413_v19 = vmul.f32 %v410_v32, %v407_v3 }
 0x286   :  { %v333_v55 = vpop.permute.xlu1 %332 }
 0x287   :  { %v334_v58 = vsel %vm87_vm4, %v331_v35, %v333_v55  ;;  %v335_v47 = vsel %vm87_vm4, %v333_v55, %v331_v35 }
 0x288   :  { %v340_v0 = vmul.f32 %v338_v30, %v335_v47  ;;  %v341_v1 = vmul.f32 %v338_v30, %v334_v58 }
 0x2cd   :  { %v319_v4 = vpop.permute.xlu1 %318  ;;  %v391_v57 = vpop.permute.xlu0 %390 }
 0x2d1   :  { %v345_v56 = vpop.permute.xlu1 %344 }
 0x2d3   :  { %v347_v46 = vpop.permute.xlu0 %346 }
 0x2d4   :  { %v348_v6 = vsel %vm87_vm4, %v345_v56, %v347_v46  ;;  %v349_v7 = vsel %vm87_vm4, %v347_v46, %v345_v56 }
 0x2d5   :  { %v317_v59 = vpop.permute.xlu1 %316  ;;  %v354_v16 = vmul.f32 %v352_v31, %v349_v7  ;;  %v355_v17 = vmul.f32 %v352_v31, %v348_v6 }
 0x2d6   :  { %v320_v60 = vsel %vm87_vm4, %v317_v59, %v319_v4  ;;  %v321_v61 = vsel %vm87_vm4, %v319_v4, %v317_v59 }
 0x2d7   :  { %v326_v62 = vmul.f32 %v324_v29, %v321_v61  ;;  %v327_v63 = vmul.f32 %v324_v29, %v320_v60  ;;  %v419_v20 = vpop.permute.xlu0 %418 }
 0x2d9   :  { %v389_v8 = vpop.permute.xlu1 %388  ;;  %v342_v9 = vadd.f32 %v340_v0, %v326_v62  ;;  %v343_v10 = vadd.f32 %v341_v1, %v327_v63 }
 0x2da   :  { %v392_v11 = vsel %vm161_vm5, %v389_v8, %v391_v57  ;;  %v393_v12 = vsel %vm161_vm5, %v391_v57, %v389_v8 }
 0x2db   :  { %v398_v13 = vmul.f32 %v396_v52, %v392_v11  ;;  %v399_v14 = vmul.f32 %v396_v52, %v393_v12  ;;  %v356_v23 = vadd.f32 %v354_v16, %v342_v9  ;;  %v357_v24 = vadd.f32 %v355_v17, %v343_v10  ;;  %v445_v48 = vpop.permute.xlu0 %444 }
 0x2dd   :  { %v417_v22 = vpop.permute.xlu1 %416  ;;  %v414_v28 = vadd.f32 %v412_v18, %v398_v13  ;;  %v415_v29 = vadd.f32 %v413_v19, %v399_v14  ;;  %v359_v31 = vmul.f32 %v768_v33, %v357_v24  ;;  %v358_v32 = vmul.f32 %v773_v37, %v356_v23 }
 0x2de   :  { %v420_v26 = vsel %vm161_vm5, %v417_v22, %v419_v20  ;;  %v421_v27 = vsel %vm161_vm5, %v419_v20, %v417_v22 }
 0x2df   :  { %v426_v30 = vmul.f32 %v424_v53, %v420_v26  ;;  %v427_v21 = vmul.f32 %v424_v53, %v421_v27  ;;  %v387_v38 = vadd.f32 %v385_v51, %v359_v31  ;;  %v386_v39 = vadd.f32 %v384_v50, %v358_v32 }
 0x2e1   :  { %v428_v25 = vadd.f32 %v426_v30, %v414_v28  ;;  %v429_v34 = vadd.f32 %v427_v21, %v415_v29 }
 0x2e3   :  { %v431_v35 = vmul.f32 %v776_v40, %v429_v34  ;;  %v430_v36 = vmul.f32 %v779_v41, %v428_v25 }
 0x2e5   :  { %v433_v42 = vadd.f32 %v431_v35, %v387_v38  ;;  %v432_v43 = vadd.f32 %v430_v36, %v386_v39 }
 0x2ea   :  { %v436_v15 = vpop.permute.xlu1 %435 }
 0x2eb   :  { %v439_v44 = vadd.f32 %v436_v15, %v433_v42  ;;  %v438_v45 = vadd.f32 %v436_v15, %v432_v43 }
 0x2ed   :  { %478 = vmatprep.subr.mxu1 %v439_v44 }
 0x2ee   :  { %479 = vmatpush1.msra.mxu1 %v438_v45 }
 0x2ef   :  { %542 = vmatmul.mubr.msk.f32.vlgmr.msra.gmra.mxu1 %vm216_vm10, %v445_v48  ;;  %v442_v49 = vpop.permute.xlu1 %441 }
 0x3af   :  { %v514_v33 = vpop.f32.mrf.mxu1 }
 0x3b0   :  { %v515_v52 = vadd.f32 %v514_v33, %v442_v49 }
 0x3b1   :  { %v516_v37 = vpop.f32.mrf.mxu1 }
 0x3b2   :  { %v521_v53 = vmul.f32 0.70710677, %v515_v52  ;;  %v517_v40 = vadd.f32 %v516_v37, %v442_v49  ;;  %v519_v51 = vmul.f32 0.5, %v515_v52 }
 0x3b4   :  { %599 = verf.f32 %v521_v53  ;;  %v522_v41 = vmul.f32 0.70710677, %v517_v40  ;;  %v520_v5 = vmul.f32 0.5, %v517_v40 }
 0x3b6   :  { %601 = verf.f32 %v522_v41 }
 0x3c1   :  { %v600_v50 = vpop.eup %599 }
 0x3c2   :  { %v525_v54 = vadd.f32 1.0, %v600_v50 }
 0x3c3   :  { %v602_v55 = vpop.eup %601 }
 0x3c4   :  { %v527_v4 = vmul.f32 %v525_v54, %v519_v51  ;;  %v526_v56 = vadd.f32 1.0, %v602_v55 }
 0x3c6   :  { %529 = vst [vmem:[%s876_s2] sm:$0xff] %v527_v4  ;;  %v528_v57 = vmul.f32 %v526_v56, %v520_v5 }
 0x3c8   :  { %530 = vst [vmem:[%s876_s2 + $0x8] sm:$0xff] %v528_v57 }

</bundles_post_ra>
